<compile_context>
chip_gen: v7x
topology: tpu7x:2x2x1
jax: 0.10.0
libtpu: 0.0.40
codegen_flags: <defaults>
</compile_context>

<pallas_src>
import jax
import jax.numpy as jnp
from jax.experimental import pallas as pl
from jax.experimental.pallas import tpu as pltpu


def _round_up(x, m):
    return ((x + m - 1) // m) * m


def _pick_tb(B, max_tb=4096):
    """Batch tile: as large as possible, but keep >= 2 grid steps for
    moderate B (v7x has 2 TensorCores sharing the 'parallel' axis)."""
    if B <= 16:
        return B  # single tile equal to the full batch dim (legal block)
    return min(max_tb, _round_up(pl.cdiv(B, 2), 16))


def _mlp_kernel(z_ref, xq_ref, w1z_ref, w1x_ref, b1_ref, w2_ref, b2_ref, o_ref):
    # First layer: the concat([z, x_q]) is fused as two partial matmuls that
    # accumulate into the same f32 value (w1 was split row-wise).
    h = jnp.dot(z_ref[...], w1z_ref[...], preferred_element_type=jnp.float32)
    h = h + jnp.dot(xq_ref[...], w1x_ref[...], preferred_element_type=jnp.float32)
    h = jnp.maximum(h + b1_ref[...], 0.0)          # bias + ReLU in f32 (v5e-safe)
    # Second layer; cast to the weight dtype only at the matmul input.
    y = jnp.dot(h.astype(w2_ref.dtype), w2_ref[...],
                preferred_element_type=jnp.float32)
    o_ref[...] = (y + b2_ref[...]).astype(o_ref.dtype)


def init_params(key, dim, z_dim, hidden_dim, dtype=jnp.float32):
    """Raw parameters, weights stored [in, out]."""
    in_f = 2 * dim + z_dim
    k1, k2, k3, k4 = jax.random.split(key, 4)
    w1 = jax.random.normal(k1, (in_f, hidden_dim), dtype) * (1.0 / jnp.sqrt(in_f))
    b1 = jax.random.normal(k2, (1, hidden_dim), dtype) * 0.01
    w2 = jax.random.normal(k3, (hidden_dim, dim), dtype) * (1.0 / jnp.sqrt(hidden_dim))
    b2 = jax.random.normal(k4, (1, dim), dtype) * 0.01
    return {"w1": w1, "b1": b1, "w2": w2, "b2": b2}


def prepare_params(params, z_dim, compute_dtype=None):
    """One-time preprocessing: split w1 for the fused concat, zero-pad the
    hidden dim to a multiple of 128 (MXU/lane friendly), and optionally cast
    weights to compute_dtype (bf16 recommended on v6e/v7x).  The output
    feature dim is deliberately NOT padded (kept narrow for the HBM write)."""
    w1, b1, w2, b2 = params["w1"], params["b1"], params["w2"], params["b2"]
    hid = w1.shape[1]
    out_f = w2.shape[1]
    hid_p = _round_up(hid, 128)
    cdt = compute_dtype if compute_dtype is not None else w1.dtype
    return {
        "w1_z": jnp.pad(w1[:z_dim], ((0, 0), (0, hid_p - hid))).astype(cdt),
        "w1_x": jnp.pad(w1[z_dim:], ((0, 0), (0, hid_p - hid))).astype(cdt),
        "b1": jnp.pad(b1.reshape(1, hid), ((0, 0), (0, hid_p - hid))).astype(jnp.float32),
        "w2": jnp.pad(w2, ((0, hid_p - hid), (0, 0))).astype(cdt),
        "b2": b2.reshape(1, out_f).astype(jnp.float32),
    }


def raven_mlp_prediction(z, x_q, prep):
    """z: [B, z_dim], x_q: [B, 2, dim], prep from prepare_params -> [B, 1, dim]."""
    B = x_q.shape[0]
    dim = x_q.shape[-1]
    z_dim = z.shape[-1]
    two_dim = 2 * dim
    out_dtype = x_q.dtype

    w1_z, w1_x, b1, w2, b2 = (prep["w1_z"], prep["w1_x"], prep["b1"],
                              prep["w2"], prep["b2"])
    hid_p, out_f = w2.shape
    assert w1_z.shape[0] == z_dim and w1_x.shape[0] == two_dim and out_f == dim
    cdt = w1_z.dtype  # compute dtype (f32 or bf16)

    xq = x_q.reshape(B, two_dim)  # view (glue, plain JAX)
    if z.dtype != cdt:
        z = z.astype(cdt)
    if xq.dtype != cdt:
        xq = xq.astype(cdt)

    TB = _pick_tb(B)
    grid = (pl.cdiv(B, TB),)

    act_itemsize = jnp.dtype(cdt).itemsize
    out_itemsize = jnp.dtype(out_dtype).itemsize
    weight_bytes = sum(int(a.size) * a.dtype.itemsize
                       for a in (w1_z, w1_x, b1, w2, b2))

    # Advisory cost estimate (honest: unpadded output bytes).
    cost = pl.CostEstimate(
        flops=2 * B * ((z_dim + two_dim) * hid_p + hid_p * out_f),
        transcendentals=0,
        bytes_accessed=int(weight_bytes
                           + B * (z_dim + two_dim) * act_itemsize
                           + B * out_f * out_itemsize),
    )

    # VMEM need per step: double-buffered activation/output tiles, resident
    # weights (counted twice for pipeline buffers), f32 intermediates.
    step_bytes = (2 * TB * (z_dim + two_dim) * act_itemsize
                  + 2 * TB * out_f * out_itemsize
                  + 2 * weight_bytes
                  + TB * (hid_p + out_f) * 4)
    vmem_limit = int(min(max(2 * step_bytes, 4 * 1024 * 1024), 32 * 1024 * 1024))

    y = pl.pallas_call(
        _mlp_kernel,
        out_shape=jax.ShapeDtypeStruct((B, out_f), out_dtype),
        grid=grid,
        in_specs=[
            pl.BlockSpec((TB, z_dim), lambda i: (i, 0)),       # z tile
            pl.BlockSpec((TB, two_dim), lambda i: (i, 0)),     # x_q tile
            pl.BlockSpec((z_dim, hid_p), lambda i: (0, 0)),    # w1_z (resident)
            pl.BlockSpec((two_dim, hid_p), lambda i: (0, 0)),  # w1_x (resident)
            pl.BlockSpec((1, hid_p), lambda i: (0, 0)),        # b1   (resident)
            pl.BlockSpec((hid_p, out_f), lambda i: (0, 0)),    # w2   (resident)
            pl.BlockSpec((1, out_f), lambda i: (0, 0)),        # b2   (resident)
        ],
        out_specs=pl.BlockSpec((TB, out_f), lambda i: (i, 0)),
        compiler_params=pltpu.CompilerParams(
            dimension_semantics=("parallel",),
            vmem_limit_bytes=vmem_limit,
        ),
        cost_estimate=cost,
    )(z, xq, w1_z, w1_x, b1, w2, b2)

    # unsqueeze(1)
    return y[:, None, :]


def _reference(z, x_q, params):
    B, _, dim = x_q.shape
    x = jnp.concatenate([z, x_q.reshape(B, 2 * dim)], axis=-1)
    h = jnp.maximum(x @ params["w1"] + params["b1"], 0.0)
    y = h @ params["w2"] + params["b2"]
    return y[:, None, :]


if __name__ == "__main__":
    dim, z_dim, hidden_dim = 16, 8, 32

    key = jax.random.PRNGKey(0)
    kp, kz, kx, kz2, kx2 = jax.random.split(key, 5)
    params = init_params(kp, dim, z_dim, hidden_dim)
    prep_f32 = prepare_params(params, z_dim)                     # exact path
    prep_bf16 = prepare_params(params, z_dim, jnp.bfloat16)      # v6e/v7x fast path

    # Small-shape check (single grid step, ragged-free).
    batch = 4
    z = jax.random.normal(kz, (batch, z_dim), jnp.float32)
    x_q = jax.random.normal(kx, (batch, 2, dim), jnp.float32)
    y = jax.block_until_ready(raven_mlp_prediction(z, x_q, prep_f32))
    y_ref = _reference(z, x_q, params)
    assert y.shape == (batch, 1, dim), y.shape
    assert jnp.allclose(y, y_ref, atol=1e-5, rtol=1e-5), "mismatch vs reference (B=4)"

    # Larger batch: exercises multi-step grid and the ragged edge block
    # (600 rows, two tiles of 304 -> last tile partially out of bounds).
    batch2 = 600
    z2 = jax.random.normal(kz2, (batch2, z_dim), jnp.float32)
    x_q2 = jax.random.normal(kx2, (batch2, 2, dim), jnp.float32)
    y2 = jax.block_until_ready(raven_mlp_prediction(z2, x_q2, prep_f32))
    y2_ref = _reference(z2, x_q2, params)
    assert y2.shape == (batch2, 1, dim), y2.shape
    assert jnp.allclose(y2, y2_ref, atol=1e-5, rtol=1e-5), "mismatch vs reference (B=600)"

    # bf16 compute path (halves HBM traffic / doubles MXU rate on v6e/v7x);
    # f32 accumulation keeps it close to the f32 reference.
    y2b = jax.block_until_ready(raven_mlp_prediction(z2, x_q2, prep_bf16))
    assert y2b.shape == (batch2, 1, dim), y2b.shape
    assert jnp.allclose(y2b.astype(jnp.float32), y2_ref, atol=1e-1, rtol=1e-1), \
        "mismatch vs reference (bf16 path)"

    print("KERNEL_OK")
</pallas_src>

<mosaic_0001>
module attributes {stable_mosaic.version = 11 : i64} {
  func.func @_mlp_kernel(%arg0: i32, %arg1: memref<4x8xf32, #tpu.memory_space<vmem>>, %arg2: memref<4x32xf32, #tpu.memory_space<vmem>>, %arg3: memref<8x128xf32, #tpu.memory_space<vmem>>, %arg4: memref<32x128xf32, #tpu.memory_space<vmem>>, %arg5: memref<1x128xf32, #tpu.memory_space<vmem>>, %arg6: memref<128x16xf32, #tpu.memory_space<vmem>>, %arg7: memref<1x16xf32, #tpu.memory_space<vmem>>, %arg8: memref<4x16xf32, #tpu.memory_space<vmem>>) attributes {dimension_semantics = [#tpu.dimension_semantics<parallel>], iteration_bounds = array<i64: 1>, scalar_prefetch = 0 : i64, scratch_operands = 0 : i64, tpu.core_type = #tpu.core_type<tc>, window_params = [{transform_indices = @transform_0, window_bounds = array<i64: 4, 8>}, {transform_indices = @transform_1, window_bounds = array<i64: 4, 32>}, {pipeline_mode = #tpu.pipeline_mode<synchronous>, transform_indices = @transform_2, window_bounds = array<i64: 8, 128>}, {pipeline_mode = #tpu.pipeline_mode<synchronous>, transform_indices = @transform_3, window_bounds = array<i64: 32, 128>}, {pipeline_mode = #tpu.pipeline_mode<synchronous>, transform_indices = @transform_4, window_bounds = array<i64: 1, 128>}, {pipeline_mode = #tpu.pipeline_mode<synchronous>, transform_indices = @transform_5, window_bounds = array<i64: 128, 16>}, {pipeline_mode = #tpu.pipeline_mode<synchronous>, transform_indices = @transform_6, window_bounds = array<i64: 1, 16>}, {transform_indices = @transform_7, window_bounds = array<i64: 4, 16>}]} {
    %c0 = arith.constant 0 : index
    %c0_0 = arith.constant 0 : index
    %0 = vector.load %arg1[%c0, %c0_0] : memref<4x8xf32, #tpu.memory_space<vmem>>, vector<4x8xf32>
    %c0_1 = arith.constant 0 : index
    %c0_2 = arith.constant 0 : index
    %1 = vector.load %arg3[%c0_1, %c0_2] : memref<8x128xf32, #tpu.memory_space<vmem>>, vector<8x128xf32>
    %cst = arith.constant dense<0.000000e+00> : vector<4x128xf32>
    %2 = tpu.matmul %0, %1, %cst {dimension_numbers = #tpu.dot_dimension_numbers<[1], [0], [0], [1], [0, 0, 1, 1], [], []>} : vector<4x8xf32>, vector<8x128xf32>, vector<4x128xf32> -> vector<4x128xf32>
    %c0_3 = arith.constant 0 : index
    %c0_4 = arith.constant 0 : index
    %3 = vector.load %arg2[%c0_3, %c0_4] : memref<4x32xf32, #tpu.memory_space<vmem>>, vector<4x32xf32>
    %c0_5 = arith.constant 0 : index
    %c0_6 = arith.constant 0 : index
    %4 = vector.load %arg4[%c0_5, %c0_6] : memref<32x128xf32, #tpu.memory_space<vmem>>, vector<32x128xf32>
    %cst_7 = arith.constant dense<0.000000e+00> : vector<4x128xf32>
    %5 = tpu.matmul %3, %4, %cst_7 {dimension_numbers = #tpu.dot_dimension_numbers<[1], [0], [0], [1], [0, 0, 1, 1], [], []>} : vector<4x32xf32>, vector<32x128xf32>, vector<4x128xf32> -> vector<4x128xf32>
    %6 = arith.addf %2, %5 : vector<4x128xf32>
    %c0_8 = arith.constant 0 : index
    %c0_9 = arith.constant 0 : index
    %7 = vector.load %arg5[%c0_8, %c0_9] : memref<1x128xf32, #tpu.memory_space<vmem>>, vector<1x128xf32>
    %8 = vector.broadcast %7 : vector<1x128xf32> to vector<4x128xf32>
    %9 = arith.addf %6, %8 : vector<4x128xf32>
    %cst_10 = arith.constant 0.000000e+00 : f32
    %10 = vector.broadcast %cst_10 : f32 to vector<4x128xf32>
    %11 = arith.maximumf %9, %10 : vector<4x128xf32>
    %c0_11 = arith.constant 0 : index
    %c0_12 = arith.constant 0 : index
    %12 = vector.load %arg6[%c0_11, %c0_12] : memref<128x16xf32, #tpu.memory_space<vmem>>, vector<128x16xf32>
    %cst_13 = arith.constant dense<0.000000e+00> : vector<4x16xf32>
    %13 = tpu.matmul %11, %12, %cst_13 {dimension_numbers = #tpu.dot_dimension_numbers<[1], [0], [0], [1], [0, 0, 1, 1], [], []>} : vector<4x128xf32>, vector<128x16xf32>, vector<4x16xf32> -> vector<4x16xf32>
    %c0_14 = arith.constant 0 : index
    %c0_15 = arith.constant 0 : index
    %14 = vector.load %arg7[%c0_14, %c0_15] : memref<1x16xf32, #tpu.memory_space<vmem>>, vector<1x16xf32>
    %15 = vector.broadcast %14 : vector<1x16xf32> to vector<4x16xf32>
    %16 = arith.addf %13, %15 : vector<4x16xf32>
    %c0_16 = arith.constant 0 : index
    %c0_17 = arith.constant 0 : index
    %17 = vector.load %arg8[%c0_16, %c0_17] : memref<4x16xf32, #tpu.memory_space<vmem>>, vector<4x16xf32>
    tpu.vector_store %arg8[%c0_16, %c0_17], %16 {strides = array<i32>} : memref<4x16xf32, #tpu.memory_space<vmem>>, vector<4x16xf32>,
    return
  }
  func.func @transform_0(%arg0: i32) -> (i32, i32) {
    %c0_i32 = arith.constant 0 : i32
    %c0_i32_0 = arith.constant 0 : i32
    return %arg0, %c0_i32 : i32, i32
  }
  func.func @transform_1(%arg0: i32) -> (i32, i32) {
    %c0_i32 = arith.constant 0 : i32
    %c0_i32_0 = arith.constant 0 : i32
    return %arg0, %c0_i32 : i32, i32
  }
  func.func @transform_2(%arg0: i32) -> (i32, i32) {
    %c0_i32 = arith.constant 0 : i32
    %c0_i32_0 = arith.constant 0 : i32
    %c0_i32_1 = arith.constant 0 : i32
    return %c0_i32, %c0_i32_0 : i32, i32
  }
  func.func @transform_3(%arg0: i32) -> (i32, i32) {
    %c0_i32 = arith.constant 0 : i32
    %c0_i32_0 = arith.constant 0 : i32
    %c0_i32_1 = arith.constant 0 : i32
    return %c0_i32, %c0_i32_0 : i32, i32
  }
  func.func @transform_4(%arg0: i32) -> (i32, i32) {
    %c0_i32 = arith.constant 0 : i32
    %c0_i32_0 = arith.constant 0 : i32
    %c0_i32_1 = arith.constant 0 : i32
    return %c0_i32, %c0_i32_0 : i32, i32
  }
  func.func @transform_5(%arg0: i32) -> (i32, i32) {
    %c0_i32 = arith.constant 0 : i32
    %c0_i32_0 = arith.constant 0 : i32
    %c0_i32_1 = arith.constant 0 : i32
    return %c0_i32, %c0_i32_0 : i32, i32
  }
  func.func @transform_6(%arg0: i32) -> (i32, i32) {
    %c0_i32 = arith.constant 0 : i32
    %c0_i32_0 = arith.constant 0 : i32
    %c0_i32_1 = arith.constant 0 : i32
    return %c0_i32, %c0_i32_0 : i32, i32
  }
  func.func @transform_7(%arg0: i32) -> (i32, i32) {
    %c0_i32 = arith.constant 0 : i32
    %c0_i32_0 = arith.constant 0 : i32
    return %arg0, %c0_i32 : i32, i32
  }
}

</mosaic_0001>

<bundles_post_ra>
// kernel: tpu_custom_call.1
= control target key start
LH: loop header
LB: loop body
LE: loop exit
PB: predicated region body
PF: predicated region fallthrough
CT: control target
= control target key end

     0   :  { %v437_v3 = vmov 0.0|0.0   ;;  %vm438_vm0 = vmmov 0   ;;  %v439_v6 = vmov 0.0   ;;  %s571_s0 = inlined_call_operand.vmem [shape: f32[4,8], index: 0, kind: input, shape index: {}]   ;;  %s572_s1 = inlined_call_operand.vmem [shape: f32[4,32], index: 1, kind: input, shape index: {}]   ;;  %s573_s2 = inlined_call_operand.vmem [shape: f32[8,128], index: 2, kind: input, shape index: {}]   ;;  %s574_s3 = inlined_call_operand.vmem [shape: f32[32,128], index: 3, kind: input, shape index: {}]   ;;  %s575_s4 = inlined_call_operand.vmem [shape: f32[1,128], index: 4, kind: input, shape index: {}]   ;;  %s576_s5 = inlined_call_operand.vmem [shape: f32[128,16], index: 5, kind: input, shape index: {}]   ;;  %s577_s6 = inlined_call_operand.vmem [shape: f32[1,16], index: 6, kind: input, shape index: {}]   ;;  %s578_s7 = inlined_call_operand.hbm [shape: f32[4,16], index: 7, kind: output, shape index: {}]  }
   0x1   :  { %v30_v0 = vld [vmem:[%s574_s3] sm:$0xff]  ;;  %v31_v1 = vld [vmem:[%s574_s3 + $0x8] sm:$0xff]  ;;  %v32_v2 = vld [vmem:[%s574_s3 + $0x10] sm:$0xff]  ;;  %379 = vmatprep.subr.bf16.mxu0 %v437_v3  ;;  %336 = vmatprep.mubr.msk.f32.mxu0 %vm438_vm0, %v439_v6 }
   0x2   :  { %v380_v4 = vpack.c.bf16 %v31_v1, %v30_v0  ;;  %v33_v5 = vld [vmem:[%s574_s3 + $0x18] sm:$0xff]  ;;  %385 = vmatprep.subr.bf16.mxu1 %v437_v3  ;;  %v191_v7 = vld [vmem:[%s576_s5] sm:$0xff]  ;;  %v192_v8 = vld [vmem:[%s576_s5 + $0x8] sm:$0xff]  ;;  %376 = vmatprep.mubr.msk.f32.mxu1 %vm438_vm0, %v439_v6 }
   0x3   :  { %v383_v9 = vpack.c.bf16 %v33_v5, %v32_v2  ;;  %v386_v10 = vpack.c.bf16 %v192_v8, %v191_v7  ;;  %v193_v11 = vld [vmem:[%s576_s5 + $0x10] sm:$0xff]  ;;  %v194_v12 = vld [vmem:[%s576_s5 + $0x18] sm:$0xff] }
   0x4   :  { %381 = vmatpush3.bf16.msra.mxu0 %v380_v4  ;;  %v389_v13 = vpack.c.bf16 %v194_v12, %v193_v11 }
   0x5   :  { %382 = vmatprep.subr.bf16.mxu0 %v437_v3  ;;  %387 = vmatpush3.bf16.msra.mxu1 %v386_v10 }
   0x6   :  { %12 = vsyncpa [#allocation3], 0  ;;  %388 = vmatprep.subr.bf16.mxu1 %v437_v3  ;;  %v195_v14 = vld [vmem:[%s576_s5 + $0x20] sm:$0xff]  ;;  %v196_v15 = vld [vmem:[%s576_s5 + $0x28] sm:$0xff]  ;;  %vm34_vm1 = vcmask 261120   ;;  %vm108_vm2 = vcmask 64512  }
   0x7   :  { %v29_v16 = vld [vmem:[%s572_s1] sm:$0xf]  ;;  %v392_v18 = vpack.c.bf16 %v196_v15, %v195_v14  ;;  %v197_v19 = vld [vmem:[%s576_s5 + $0x30] sm:$0xff]  ;;  %v198_v20 = vld [vmem:[%s576_s5 + $0x38] sm:$0xff]  ;;  %s440_s23 = smov [#allocation2]   ;;  %vm284_vm3 = vcmask 125952  }
   0x8   :  { %384 = vmatpush3.bf16.msra.mxu0 %v383_v9  ;;  %v28_v17 = vld [vmem:[%s573_s2] sm:$0xff]  ;;  %v395_v22 = vpack.c.bf16 %v198_v20, %v197_v19  ;;  %v200_v24 = vld [vmem:[%s576_s5 + $0x48] sm:$0xff]  ;;  %v201_v26 = vld [vmem:[%s576_s5 + $0x50] sm:$0xff] }
   0x9   :  { %339 = vmatprep.subr.mxu0 %v439_v6  ;;  %390 = vmatpush3.bf16.msra.mxu1 %v389_v13  ;;  %v27_v21 = vld [vmem:[%s571_s0] sm:$0xf]  ;;  %v202_v27 = vld [vmem:[%s576_s5 + $0x58] sm:$0xff]  ;;  %v204_v30 = vld [vmem:[%s576_s5 + $0x68] sm:$0xff] }
   0xa   :  { %391 = vmatprep.subr.bf16.mxu1 %v437_v3  ;;  %v199_v23 = vld [vmem:[%s576_s5 + $0x40] sm:$0xff]  ;;  %v401_v28 = vpack.c.bf16 %v202_v27, %v201_v26  ;;  %v205_v32 = vld [vmem:[%s576_s5 + $0x70] sm:$0xff]  ;;  %v206_v33 = vld [vmem:[%s576_s5 + $0x78] sm:$0xff] }
   0xb   :  { %337 = vmatmul.mubr.msk.f32.vlgmr.msra.gmra.mrb[0].mxu0 %vm34_vm1, %v29_v16  ;;  %v398_v25 = vpack.c.bf16 %v200_v24, %v199_v23  ;;  %v203_v29 = vld [vmem:[%s576_s5 + $0x60] sm:$0xff]  ;;  %v407_v34 = vpack.c.bf16 %v206_v33, %v205_v32  ;;  %s292_s5 = sshll.u32 %s440_s23, 4  ;;  %s293_s5 = int_to_ptr.vmem [resolvable:$true] %s292_s5 }
   0xc   :  { %340 = vmatpush3.msra.mxu0 %v28_v17  ;;  %341 = vmatprep.mubr.msk.f32.mxu0 %vm438_vm0, %v439_v6  ;;  %v404_v31 = vpack.c.bf16 %v204_v30, %v203_v29  ;;  %v302_v38 = vld [vmem:[%s575_s4] ss:$0 sm:$0xff]  ;;  %s413_s24 = scalar_lea.vmem %s293_s5, 64  ;;  %p418_p1 = scmp.lt.s32.totalorder %s293_s5, %s293_s5 }
   0xd   :  { %393 = vmatpush3.bf16.msra.mxu1 %v392_v18  ;;  %v303_v43 = vld [vmem:[%s577_s6] ss:$0 sm:$0xff]  ;;  %p414_p0 = scmp.ne.s32.totalorder %s293_s5, %s413_s24  ;;  %p419_p2 = scmp.lt.s32.totalorder %s413_s24, %s413_s24 }
   0xe   :  { %394 = vmatprep.subr.bf16.mxu1 %v437_v3 }
   0xf   :  { %342 = vmatmul.mubr.msk.f32.vlgmr.msra.gmra.mrb[2].mxu0 %vm108_vm2, %v27_v21  ;;  %p420_p3 = por %p419_p2, %p418_p1 }
  0x11   :  { %396 = vmatpush3.bf16.msra.mxu1 %v395_v22  ;;  %p421_p4 = pnand %p420_p3, %p414_p0 }
  0x12   :  { %397 = vmatprep.subr.bf16.mxu1 %v437_v3 }
  0x15   :  { %399 = vmatpush3.bf16.msra.mxu1 %v398_v25 }
  0x16   :  { %400 = vmatprep.subr.bf16.mxu1 %v437_v3 }
  0x19   :  { %402 = vmatpush3.bf16.msra.mxu1 %v401_v28 }
  0x1a   :  { %403 = vmatprep.subr.bf16.mxu1 %v437_v3 }
  0x1d   :  { %405 = vmatpush3.bf16.msra.mxu1 %v404_v31 }
  0x1e   :  { %406 = vmatprep.subr.bf16.mxu1 %v437_v3 }
  0x21   :  { %408 = vmatpush3.bf16.msra.mxu1 %v407_v34 }
  0xde   :  { %v104_v35 = vpop.f32.mrb[0].mxu0 }
  0xdf   :  { %v338_v36 = vpop.f32.mrb[1].mxu0 }
  0xe2   :  { %v178_v37 = vpop.f32.mrb[2].mxu0 }
  0xe3   :  { %v179_v39 = vadd.f32 %v178_v37, %v104_v35  ;;  %v343_v40 = vpop.f32.mrb[3].mxu0 }
  0xe5   :  { %v189_v41 = vadd.f32 %v302_v38, %v179_v39 }
  0xe7   :  { %v190_v42 = vmax.f32 %v189_v41, 0.0 }
  0xe9   :  { %377 = vmatmul.mubr.f32.vlgmr.msra.gmra.mrb[0].mxu1 %v190_v42 }
 0x1bc   :  { %v280_v44 = vpop.f32.mrb[0].mxu1 }
 0x1bd   :  { %v281_v45 = vadd.f32 %v303_v43, %v280_v44  ;;  %v378_v46 = vpop.f32.mrb[1].mxu1 }
 0x1bf   :  { %285 = vst.msk [vmem:[#allocation2] sm:$0xf] %vm284_vm3, %v281_v45 }
 0x1c0   :  { %424 = shalt.err (!%p421_p4)
}
 0x1c1   :  { %s425_s26 = scalar_lea.hbm %s578_s7, 64 }
 0x1c2   :  { %p426_p5 = scmp.ne.s32.totalorder %s578_s7, %s425_s26  ;;  %p429_p6 = scmp.lt.u32.totalorder %s425_s26, %s578_s7 }
 0x1c4   :  { %p431_p7 = pnand %p429_p6, %p426_p5 }
 0x1c6   :  { %434 = shalt.err (!%p431_p7)
}
 0x1c7   :  { %295 = dma.vmem_to_hbm [thread:$0]  %s293_s5, 64, %s578_s7, [#allocation3]  }
 0x1c8   :  { %435 = dma.done.wait [#allocation3], 64  }
 0x1c9   :  { %436 = vsyncadd [#allocation3], 4294967232 }
 0x1ca   :  { %299 = vsyncpa [#allocation3], 1 }

</bundles_post_ra>
